<compile_context>
chip_gen: v7x
topology: tpu7x:2x2x1
jax: 0.10.0
libtpu: 0.0.40
codegen_flags: <defaults>
</compile_context>

<pallas_src>
import math
import jax
import jax.numpy as jnp
from jax.experimental import pallas as pl
from jax.experimental.pallas import tpu as pltpu

# ---- small, shape-consistent config (n_embd % n_head == 0) ----------------
B, T, C, H = 2, 8, 32, 4
HD = C // H
EPS = 1e-5                     # torch.nn.LayerNorm default
MXU_DT = jnp.bfloat16          # MXU operand dtype; accumulation stays f32


def _layernorm(x, g, b):
    mu = jnp.mean(x, axis=-1, keepdims=True)
    var = jnp.mean((x - mu) ** 2, axis=-1, keepdims=True)
    return (x - mu) * jax.lax.rsqrt(var + EPS) * g + b


def _gelu_tanh(x):
    # nn.GELU(approximate='tanh')
    c = math.sqrt(2.0 / math.pi)
    return 0.5 * x * (1.0 + jnp.tanh(c * (x + 0.044715 * x * x * x)))


def block_kernel(x_ref, ln1g_ref, ln1b_ref, wqkv_ref, bqkv_ref,
                 wproj_ref, bproj_ref, ln2g_ref, ln2b_ref,
                 wfc_ref, bfc_ref, wp2_ref, bp2_ref, o_ref):
    x = x_ref[...].astype(jnp.float32)                           # (T, C)

    # ---------------- attention branch ----------------
    h = _layernorm(x, ln1g_ref[...], ln1b_ref[...])              # f32 (T, C)

    # flat, lane-dense QKV projection: (T, C) @ (C, 3C) -> (T, 3C)
    qkv = jnp.dot(h.astype(MXU_DT), wqkv_ref[...],
                  preferred_element_type=jnp.float32) + bqkv_ref[...]

    # per-head tensors from static lane slices (PyTorch head layout);
    # 1/sqrt(HD) folded into q (O(T*HD)) instead of the (H,T,T) scores.
    scale = 1.0 / math.sqrt(HD)
    qh = jnp.stack([qkv[:, 0 * C + i * HD: 0 * C + (i + 1) * HD] * scale
                    for i in range(H)])                          # (H, T, HD)
    kh = jnp.stack([qkv[:, 1 * C + i * HD: 1 * C + (i + 1) * HD]
                    for i in range(H)])                          # (H, T, HD)
    vh = jnp.stack([qkv[:, 2 * C + i * HD: 2 * C + (i + 1) * HD]
                    for i in range(H)])                          # (H, T, HD)

    # causal mask over the true sequence length only (no cross-batch waste)
    row = jax.lax.broadcasted_iota(jnp.int32, (T, T), 0)
    col = jax.lax.broadcasted_iota(jnp.int32, (T, T), 1)
    causal = row >= col

    att = jnp.einsum('htd,hsd->hts', qh.astype(MXU_DT), kh.astype(MXU_DT),
                     preferred_element_type=jnp.float32)         # f32 (H,T,T)
    att = jnp.where(causal[None], att, -1e30)                    # finite fill (f32-safe)
    att = att - jnp.max(att, axis=-1, keepdims=True)             # stable softmax
    p = jnp.exp(att)                                             # f32 (EUP)
    p = p * pl.reciprocal(jnp.sum(p, axis=-1, keepdims=True), approx=True)

    y = jnp.einsum('hts,hsd->htd', p.astype(MXU_DT), vh.astype(MXU_DT),
                   preferred_element_type=jnp.float32)           # (H, T, HD)

    # concat heads back into lanes -> single flat output projection
    y_flat = jnp.concatenate([y[i] for i in range(H)], axis=-1)  # (T, C)
    attn = jnp.dot(y_flat.astype(MXU_DT), wproj_ref[...],
                   preferred_element_type=jnp.float32) + bproj_ref[...]
    x = x + attn

    # ---------------- MLP branch ----------------
    h2 = _layernorm(x, ln2g_ref[...], ln2b_ref[...])
    m = jnp.dot(h2.astype(MXU_DT), wfc_ref[...],
                preferred_element_type=jnp.float32) + bfc_ref[...]   # (T, 4C)
    m = _gelu_tanh(m)
    m = jnp.dot(m.astype(MXU_DT), wp2_ref[...],
                preferred_element_type=jnp.float32) + bp2_ref[...]   # (T, C)

    o_ref[...] = (x + m).astype(o_ref.dtype)


def pack_params(params):
    """One-time (outside the per-call path): cast MXU-operand weights to bf16."""
    (ln1g, ln1b, wattn, battn, wproj, bproj,
     ln2g, ln2b, wfc, bfc, wp2, bp2) = params
    return (ln1g, ln1b, wattn.astype(MXU_DT), battn, wproj.astype(MXU_DT), bproj,
            ln2g, ln2b, wfc.astype(MXU_DT), bfc, wp2.astype(MXU_DT), bp2)


def gpt2_block(x, packed):
    (ln1g, ln1b, wqkv, bqkv, wproj, bproj,
     ln2g, ln2b, wfc, bfc, wp2, bp2) = packed

    seq_spec = pl.BlockSpec((None, T, C), lambda b: (b, 0, 0))   # one sequence / step

    def const_spec(shape):                                       # VMEM-resident weights
        return pl.BlockSpec(shape, lambda b: (0, 0))

    return pl.pallas_call(
        block_kernel,
        out_shape=jax.ShapeDtypeStruct((B, T, C), x.dtype),
        grid=(B,),
        in_specs=[seq_spec,
                  const_spec((1, C)), const_spec((1, C)),          # ln_1
                  const_spec((C, 3 * C)), const_spec((1, 3 * C)),  # c_attn
                  const_spec((C, C)), const_spec((1, C)),          # attn c_proj
                  const_spec((1, C)), const_spec((1, C)),          # ln_2
                  const_spec((C, 4 * C)), const_spec((1, 4 * C)),  # mlp c_fc
                  const_spec((4 * C, C)), const_spec((1, C))],     # mlp c_proj
        out_specs=seq_spec,
        compiler_params=pltpu.CompilerParams(
            dimension_semantics=("parallel",),
            vmem_limit_bytes=32 * 1024 * 1024),
    )(x, ln1g, ln1b, wqkv, bqkv, wproj, bproj,
      ln2g, ln2b, wfc, bfc, wp2, bp2)


# ---------------- pure-JAX f32 reference (for correctness check) ------------
def ref_block(x, params):
    (ln1g, ln1b, wattn, battn, wproj, bproj,
     ln2g, ln2b, wfc, bfc, wp2, bp2) = params
    out = []
    causal = jnp.tril(jnp.ones((T, T), dtype=bool))
    for b in range(B):
        xb = x[b].astype(jnp.float32)
        h = _layernorm(xb, ln1g, ln1b)
        qkv = h @ wattn + battn
        q, k, v = qkv[:, :C], qkv[:, C:2 * C], qkv[:, 2 * C:]
        qh = q.reshape(T, H, HD).transpose(1, 0, 2)
        kh = k.reshape(T, H, HD).transpose(1, 0, 2)
        vh = v.reshape(T, H, HD).transpose(1, 0, 2)
        att = jnp.einsum('htd,hsd->hts', qh, kh) / math.sqrt(HD)
        att = jnp.where(causal[None], att, -jnp.inf)
        att = jax.nn.softmax(att, axis=-1)
        y = jnp.einsum('hts,hsd->htd', att, vh).transpose(1, 0, 2).reshape(T, C)
        y = y @ wproj + bproj
        xb = xb + y
        h2 = _layernorm(xb, ln2g, ln2b)
        m = _gelu_tanh(h2 @ wfc + bfc)
        m = m @ wp2 + bp2
        out.append(xb + m)
    return jnp.stack(out, axis=0)


if __name__ == "__main__":
    key = jax.random.PRNGKey(0)
    ks = jax.random.split(key, 16)
    s = 0.02

    # Parameters (deterministic init; Linear weights stored already transposed
    # to (in, out) so the kernel computes x @ W + b == PyTorch x @ W.T + b).
    ln1g = jnp.ones((1, C), jnp.float32)
    ln1b = jnp.zeros((1, C), jnp.float32)
    wattn = s * jax.random.normal(ks[0], (C, 3 * C), jnp.float32)
    battn = s * jax.random.normal(ks[1], (1, 3 * C), jnp.float32)
    wproj = s * jax.random.normal(ks[2], (C, C), jnp.float32)
    bproj = s * jax.random.normal(ks[3], (1, C), jnp.float32)
    ln2g = jnp.ones((1, C), jnp.float32)
    ln2b = jnp.zeros((1, C), jnp.float32)
    wfc = s * jax.random.normal(ks[4], (C, 4 * C), jnp.float32)
    bfc = s * jax.random.normal(ks[5], (1, 4 * C), jnp.float32)
    wp2 = s * jax.random.normal(ks[6], (4 * C, C), jnp.float32)
    bp2 = s * jax.random.normal(ks[7], (1, C), jnp.float32)

    params = (ln1g, ln1b, wattn, battn, wproj, bproj,
              ln2g, ln2b, wfc, bfc, wp2, bp2)
    packed = pack_params(params)          # one-time bf16 cast, outside call path

    x = jax.random.normal(ks[8], (B, T, C), jnp.float32)

    out = gpt2_block(x, packed)
    out = jax.block_until_ready(out)

    ref = ref_block(x, params)
    assert out.shape == (B, T, C)
    # tolerance accounts for bf16 MXU operands + approx EUP reciprocal
    assert jnp.allclose(out, ref, atol=2e-3, rtol=2e-3), \
        f"max abs err {jnp.max(jnp.abs(out - ref))}"

    print("KERNEL_OK")
</pallas_src>

<mosaic_0001>
module attributes {stable_mosaic.version = 11 : i64} {
  func.func @block_kernel(%arg0: i32, %arg1: memref<1x8x32xf32, #tpu.memory_space<vmem>>, %arg2: memref<1x32xf32, #tpu.memory_space<vmem>>, %arg3: memref<1x32xf32, #tpu.memory_space<vmem>>, %arg4: memref<32x96xbf16, #tpu.memory_space<vmem>>, %arg5: memref<1x96xf32, #tpu.memory_space<vmem>>, %arg6: memref<32x32xbf16, #tpu.memory_space<vmem>>, %arg7: memref<1x32xf32, #tpu.memory_space<vmem>>, %arg8: memref<1x32xf32, #tpu.memory_space<vmem>>, %arg9: memref<1x32xf32, #tpu.memory_space<vmem>>, %arg10: memref<32x128xbf16, #tpu.memory_space<vmem>>, %arg11: memref<1x128xf32, #tpu.memory_space<vmem>>, %arg12: memref<128x32xbf16, #tpu.memory_space<vmem>>, %arg13: memref<1x32xf32, #tpu.memory_space<vmem>>, %arg14: memref<1x8x32xf32, #tpu.memory_space<vmem>>) attributes {dimension_semantics = [#tpu.dimension_semantics<parallel>], iteration_bounds = array<i64: 2>, scalar_prefetch = 0 : i64, scratch_operands = 0 : i64, tpu.core_type = #tpu.core_type<tc>, window_params = [{transform_indices = @transform_0, window_bounds = array<i64: 1, 8, 32>}, {pipeline_mode = #tpu.pipeline_mode<synchronous>, transform_indices = @transform_1, window_bounds = array<i64: 1, 32>}, {pipeline_mode = #tpu.pipeline_mode<synchronous>, transform_indices = @transform_2, window_bounds = array<i64: 1, 32>}, {pipeline_mode = #tpu.pipeline_mode<synchronous>, transform_indices = @transform_3, window_bounds = array<i64: 32, 96>}, {pipeline_mode = #tpu.pipeline_mode<synchronous>, transform_indices = @transform_4, window_bounds = array<i64: 1, 96>}, {pipeline_mode = #tpu.pipeline_mode<synchronous>, transform_indices = @transform_5, window_bounds = array<i64: 32, 32>}, {pipeline_mode = #tpu.pipeline_mode<synchronous>, transform_indices = @transform_6, window_bounds = array<i64: 1, 32>}, {pipeline_mode = #tpu.pipeline_mode<synchronous>, transform_indices = @transform_7, window_bounds = array<i64: 1, 32>}, {pipeline_mode = #tpu.pipeline_mode<synchronous>, transform_indices = @transform_8, window_bounds = array<i64: 1, 32>}, {pipeline_mode = #tpu.pipeline_mode<synchronous>, transform_indices = @transform_9, window_bounds = array<i64: 32, 128>}, {pipeline_mode = #tpu.pipeline_mode<synchronous>, transform_indices = @transform_10, window_bounds = array<i64: 1, 128>}, {pipeline_mode = #tpu.pipeline_mode<synchronous>, transform_indices = @transform_11, window_bounds = array<i64: 128, 32>}, {pipeline_mode = #tpu.pipeline_mode<synchronous>, transform_indices = @transform_12, window_bounds = array<i64: 1, 32>}, {transform_indices = @transform_13, window_bounds = array<i64: 1, 8, 32>}]} {
    %c0 = arith.constant 0 : index
    %c0_0 = arith.constant 0 : index
    %c0_1 = arith.constant 0 : index
    %0 = vector.load %arg1[%c0, %c0_0, %c0_1] : memref<1x8x32xf32, #tpu.memory_space<vmem>>, vector<1x8x32xf32>
    %1 = vector.shape_cast %0 : vector<1x8x32xf32> to vector<8x32xf32>
    %c0_2 = arith.constant 0 : index
    %c0_3 = arith.constant 0 : index
    %2 = vector.load %arg2[%c0_2, %c0_3] : memref<1x32xf32, #tpu.memory_space<vmem>>, vector<1x32xf32>
    %c0_4 = arith.constant 0 : index
    %c0_5 = arith.constant 0 : index
    %3 = vector.load %arg3[%c0_4, %c0_5] : memref<1x32xf32, #tpu.memory_space<vmem>>, vector<1x32xf32>
    %cst = arith.constant dense<0.000000e+00> : vector<8xf32>
    %4 = vector.multi_reduction <add>, %1, %cst [1] : vector<8x32xf32> to vector<8xf32>
    %5 = vector.shape_cast %4 : vector<8xf32> to vector<8x1xf32>
    %cst_6 = arith.constant 3.200000e+01 : f32
    %6 = vector.broadcast %cst_6 : f32 to vector<8x1xf32>
    %7 = arith.divf %5, %6 : vector<8x1xf32>
    %8 = vector.broadcast %7 : vector<8x1xf32> to vector<8x32xf32>
    %9 = arith.subf %1, %8 : vector<8x32xf32>
    %10 = arith.mulf %9, %9 : vector<8x32xf32>
    %cst_7 = arith.constant dense<0.000000e+00> : vector<8xf32>
    %11 = vector.multi_reduction <add>, %10, %cst_7 [1] : vector<8x32xf32> to vector<8xf32>
    %12 = vector.shape_cast %11 : vector<8xf32> to vector<8x1xf32>
    %cst_8 = arith.constant 3.200000e+01 : f32
    %13 = vector.broadcast %cst_8 : f32 to vector<8x1xf32>
    %14 = arith.divf %12, %13 : vector<8x1xf32>
    %15 = vector.broadcast %7 : vector<8x1xf32> to vector<8x32xf32>
    %16 = arith.subf %1, %15 : vector<8x32xf32>
    %cst_9 = arith.constant 9.99999974E-6 : f32
    %17 = vector.broadcast %cst_9 : f32 to vector<8x1xf32>
    %18 = arith.addf %14, %17 : vector<8x1xf32>
    %19 = math.rsqrt %18 : vector<8x1xf32>
    %20 = vector.broadcast %19 : vector<8x1xf32> to vector<8x32xf32>
    %21 = arith.mulf %16, %20 : vector<8x32xf32>
    %22 = vector.broadcast %2 : vector<1x32xf32> to vector<8x32xf32>
    %23 = arith.mulf %21, %22 : vector<8x32xf32>
    %24 = vector.broadcast %3 : vector<1x32xf32> to vector<8x32xf32>
    %25 = arith.addf %23, %24 : vector<8x32xf32>
    %26 = arith.truncf %25 : vector<8x32xf32> to vector<8x32xbf16>
    %c0_10 = arith.constant 0 : index
    %c0_11 = arith.constant 0 : index
    %27 = vector.load %arg4[%c0_10, %c0_11] : memref<32x96xbf16, #tpu.memory_space<vmem>>, vector<32x96xbf16>
    %cst_12 = arith.constant dense<0.000000e+00> : vector<8x96xf32>
    %28 = tpu.matmul %26, %27, %cst_12 {dimension_numbers = #tpu.dot_dimension_numbers<[1], [0], [0], [1], [0, 0, 1, 1], [], []>} : vector<8x32xbf16>, vector<32x96xbf16>, vector<8x96xf32> -> vector<8x96xf32>
    %c0_13 = arith.constant 0 : index
    %c0_14 = arith.constant 0 : index
    %29 = vector.load %arg5[%c0_13, %c0_14] : memref<1x96xf32, #tpu.memory_space<vmem>>, vector<1x96xf32>
    %30 = vector.broadcast %29 : vector<1x96xf32> to vector<8x96xf32>
    %31 = arith.addf %28, %30 : vector<8x96xf32>
    %32 = vector.extract_strided_slice %31 {offsets = [0, 0], sizes = [8, 8], strides = [1, 1]} : vector<8x96xf32> to vector<8x8xf32>
    %cst_15 = arith.constant 0.353553385 : f32
    %33 = vector.broadcast %cst_15 : f32 to vector<8x8xf32>
    %34 = arith.mulf %32, %33 : vector<8x8xf32>
    %35 = vector.extract_strided_slice %31 {offsets = [0, 8], sizes = [8, 8], strides = [1, 1]} : vector<8x96xf32> to vector<8x8xf32>
    %cst_16 = arith.constant 0.353553385 : f32
    %36 = vector.broadcast %cst_16 : f32 to vector<8x8xf32>
    %37 = arith.mulf %35, %36 : vector<8x8xf32>
    %38 = vector.extract_strided_slice %31 {offsets = [0, 16], sizes = [8, 8], strides = [1, 1]} : vector<8x96xf32> to vector<8x8xf32>
    %cst_17 = arith.constant 0.353553385 : f32
    %39 = vector.broadcast %cst_17 : f32 to vector<8x8xf32>
    %40 = arith.mulf %38, %39 : vector<8x8xf32>
    %41 = vector.extract_strided_slice %31 {offsets = [0, 24], sizes = [8, 8], strides = [1, 1]} : vector<8x96xf32> to vector<8x8xf32>
    %cst_18 = arith.constant 0.353553385 : f32
    %42 = vector.broadcast %cst_18 : f32 to vector<8x8xf32>
    %43 = arith.mulf %41, %42 : vector<8x8xf32>
    %44 = vector.shape_cast %34 : vector<8x8xf32> to vector<1x8x8xf32>
    %45 = vector.shape_cast %37 : vector<8x8xf32> to vector<1x8x8xf32>
    %46 = vector.shape_cast %40 : vector<8x8xf32> to vector<1x8x8xf32>
    %47 = vector.shape_cast %43 : vector<8x8xf32> to vector<1x8x8xf32>
    %48 = tpu.concatenate %44, %45, %46, %47 in 0 : vector<1x8x8xf32>, vector<1x8x8xf32>, vector<1x8x8xf32>, vector<1x8x8xf32> -> vector<4x8x8xf32>
    %49 = vector.extract_strided_slice %31 {offsets = [0, 32], sizes = [8, 8], strides = [1, 1]} : vector<8x96xf32> to vector<8x8xf32>
    %50 = vector.extract_strided_slice %31 {offsets = [0, 40], sizes = [8, 8], strides = [1, 1]} : vector<8x96xf32> to vector<8x8xf32>
    %51 = vector.extract_strided_slice %31 {offsets = [0, 48], sizes = [8, 8], strides = [1, 1]} : vector<8x96xf32> to vector<8x8xf32>
    %52 = vector.extract_strided_slice %31 {offsets = [0, 56], sizes = [8, 8], strides = [1, 1]} : vector<8x96xf32> to vector<8x8xf32>
    %53 = vector.shape_cast %49 : vector<8x8xf32> to vector<1x8x8xf32>
    %54 = vector.shape_cast %50 : vector<8x8xf32> to vector<1x8x8xf32>
    %55 = vector.shape_cast %51 : vector<8x8xf32> to vector<1x8x8xf32>
    %56 = vector.shape_cast %52 : vector<8x8xf32> to vector<1x8x8xf32>
    %57 = tpu.concatenate %53, %54, %55, %56 in 0 : vector<1x8x8xf32>, vector<1x8x8xf32>, vector<1x8x8xf32>, vector<1x8x8xf32> -> vector<4x8x8xf32>
    %58 = vector.extract_strided_slice %31 {offsets = [0, 64], sizes = [8, 8], strides = [1, 1]} : vector<8x96xf32> to vector<8x8xf32>
    %59 = vector.extract_strided_slice %31 {offsets = [0, 72], sizes = [8, 8], strides = [1, 1]} : vector<8x96xf32> to vector<8x8xf32>
    %60 = vector.extract_strided_slice %31 {offsets = [0, 80], sizes = [8, 8], strides = [1, 1]} : vector<8x96xf32> to vector<8x8xf32>
    %61 = vector.extract_strided_slice %31 {offsets = [0, 88], sizes = [8, 8], strides = [1, 1]} : vector<8x96xf32> to vector<8x8xf32>
    %62 = vector.shape_cast %58 : vector<8x8xf32> to vector<1x8x8xf32>
    %63 = vector.shape_cast %59 : vector<8x8xf32> to vector<1x8x8xf32>
    %64 = vector.shape_cast %60 : vector<8x8xf32> to vector<1x8x8xf32>
    %65 = vector.shape_cast %61 : vector<8x8xf32> to vector<1x8x8xf32>
    %66 = tpu.concatenate %62, %63, %64, %65 in 0 : vector<1x8x8xf32>, vector<1x8x8xf32>, vector<1x8x8xf32>, vector<1x8x8xf32> -> vector<4x8x8xf32>
    %67 = tpu.iota {dimensions = array<i32: 0>} : vector<8x8xi32>
    %68 = tpu.iota {dimensions = array<i32: 1>} : vector<8x8xi32>
    %69 = arith.cmpi sge, %67, %68 : vector<8x8xi32>
    %70 = arith.truncf %48 : vector<4x8x8xf32> to vector<4x8x8xbf16>
    %71 = arith.truncf %57 : vector<4x8x8xf32> to vector<4x8x8xbf16>
    "tpu.trace_start"() <{level = 10 : i32, message = "htd,hsd->hts"}> : () -> ()
    %cst_19 = arith.constant dense<0.000000e+00> : vector<4x8x8xf32>
    %72 = tpu.matmul %70, %71, %cst_19 {dimension_numbers = #tpu.dot_dimension_numbers<[2], [2], [1], [1], [0, 0, 0, 1, 1, 1], [0], [0]>} : vector<4x8x8xbf16>, vector<4x8x8xbf16>, vector<4x8x8xf32> -> vector<4x8x8xf32>
    "tpu.trace_stop"() : () -> ()
    %73 = vector.shape_cast %69 : vector<8x8xi1> to vector<1x8x8xi1>
    %cst_20 = arith.constant -1.000000e+30 : f32
    %74 = vector.shape_cast %73 : vector<1x8x8xi1> to vector<1x8x8xi1>
    %75 = vector.broadcast %74 : vector<1x8x8xi1> to vector<4x8x8xi1>
    %76 = vector.broadcast %cst_20 : f32 to vector<4x8x8xf32>
    %77 = arith.select %75, %72, %76 : vector<4x8x8xi1>, vector<4x8x8xf32>
    %cst_21 = arith.constant dense<0xFF800000> : vector<4x8xf32>
    %78 = vector.multi_reduction <maximumf>, %77, %cst_21 [2] : vector<4x8x8xf32> to vector<4x8xf32>
    %79 = vector.shape_cast %78 : vector<4x8xf32> to vector<4x8x1xf32>
    %80 = vector.broadcast %79 : vector<4x8x1xf32> to vector<4x8x8xf32>
    %81 = arith.subf %77, %80 : vector<4x8x8xf32>
    %82 = math.exp %81 : vector<4x8x8xf32>
    %cst_22 = arith.constant dense<0.000000e+00> : vector<4x8xf32>
    %83 = vector.multi_reduction <add>, %82, %cst_22 [2] : vector<4x8x8xf32> to vector<4x8xf32>
    %84 = vector.shape_cast %83 : vector<4x8xf32> to vector<4x8x1xf32>
    %85 = tpu.reciprocal %84 {approx = true} : vector<4x8x1xf32> -> vector<4x8x1xf32>
    %86 = vector.broadcast %85 : vector<4x8x1xf32> to vector<4x8x8xf32>
    %87 = arith.mulf %82, %86 : vector<4x8x8xf32>
    %88 = arith.truncf %87 : vector<4x8x8xf32> to vector<4x8x8xbf16>
    %89 = arith.truncf %66 : vector<4x8x8xf32> to vector<4x8x8xbf16>
    "tpu.trace_start"() <{level = 10 : i32, message = "hts,hsd->htd"}> : () -> ()
    %cst_23 = arith.constant dense<0.000000e+00> : vector<4x8x8xf32>
    %90 = tpu.matmul %88, %89, %cst_23 {dimension_numbers = #tpu.dot_dimension_numbers<[2], [1], [1], [2], [0, 0, 0, 1, 1, 2], [0], [0]>} : vector<4x8x8xbf16>, vector<4x8x8xbf16>, vector<4x8x8xf32> -> vector<4x8x8xf32>
    "tpu.trace_stop"() : () -> ()
    %91 = vector.extract_strided_slice %90 {offsets = [0, 0, 0], sizes = [1, 8, 8], strides = [1, 1, 1]} : vector<4x8x8xf32> to vector<1x8x8xf32>
    %92 = vector.shape_cast %91 : vector<1x8x8xf32> to vector<8x8xf32>
    %93 = vector.extract_strided_slice %90 {offsets = [1, 0, 0], sizes = [1, 8, 8], strides = [1, 1, 1]} : vector<4x8x8xf32> to vector<1x8x8xf32>
    %94 = vector.shape_cast %93 : vector<1x8x8xf32> to vector<8x8xf32>
    %95 = vector.extract_strided_slice %90 {offsets = [2, 0, 0], sizes = [1, 8, 8], strides = [1, 1, 1]} : vector<4x8x8xf32> to vector<1x8x8xf32>
    %96 = vector.shape_cast %95 : vector<1x8x8xf32> to vector<8x8xf32>
    %97 = vector.extract_strided_slice %90 {offsets = [3, 0, 0], sizes = [1, 8, 8], strides = [1, 1, 1]} : vector<4x8x8xf32> to vector<1x8x8xf32>
    %98 = vector.shape_cast %97 : vector<1x8x8xf32> to vector<8x8xf32>
    %99 = tpu.concatenate %92, %94, %96, %98 in 1 : vector<8x8xf32>, vector<8x8xf32>, vector<8x8xf32>, vector<8x8xf32> -> vector<8x32xf32>
    %100 = arith.truncf %99 : vector<8x32xf32> to vector<8x32xbf16>
    %c0_24 = arith.constant 0 : index
    %c0_25 = arith.constant 0 : index
    %101 = vector.load %arg6[%c0_24, %c0_25] : memref<32x32xbf16, #tpu.memory_space<vmem>>, vector<32x32xbf16>
    %cst_26 = arith.constant dense<0.000000e+00> : vector<8x32xf32>
    %102 = tpu.matmul %100, %101, %cst_26 {dimension_numbers = #tpu.dot_dimension_numbers<[1], [0], [0], [1], [0, 0, 1, 1], [], []>} : vector<8x32xbf16>, vector<32x32xbf16>, vector<8x32xf32> -> vector<8x32xf32>
    %c0_27 = arith.constant 0 : index
    %c0_28 = arith.constant 0 : index
    %103 = vector.load %arg7[%c0_27, %c0_28] : memref<1x32xf32, #tpu.memory_space<vmem>>, vector<1x32xf32>
    %104 = vector.broadcast %103 : vector<1x32xf32> to vector<8x32xf32>
    %105 = arith.addf %102, %104 : vector<8x32xf32>
    %106 = arith.addf %1, %105 : vector<8x32xf32>
    %c0_29 = arith.constant 0 : index
    %c0_30 = arith.constant 0 : index
    %107 = vector.load %arg8[%c0_29, %c0_30] : memref<1x32xf32, #tpu.memory_space<vmem>>, vector<1x32xf32>
    %c0_31 = arith.constant 0 : index
    %c0_32 = arith.constant 0 : index
    %108 = vector.load %arg9[%c0_31, %c0_32] : memref<1x32xf32, #tpu.memory_space<vmem>>, vector<1x32xf32>
    %cst_33 = arith.constant dense<0.000000e+00> : vector<8xf32>
    %109 = vector.multi_reduction <add>, %106, %cst_33 [1] : vector<8x32xf32> to vector<8xf32>
    %110 = vector.shape_cast %109 : vector<8xf32> to vector<8x1xf32>
    %cst_34 = arith.constant 3.200000e+01 : f32
    %111 = vector.broadcast %cst_34 : f32 to vector<8x1xf32>
    %112 = arith.divf %110, %111 : vector<8x1xf32>
    %113 = vector.broadcast %112 : vector<8x1xf32> to vector<8x32xf32>
    %114 = arith.subf %106, %113 : vector<8x32xf32>
    %115 = arith.mulf %114, %114 : vector<8x32xf32>
    %cst_35 = arith.constant dense<0.000000e+00> : vector<8xf32>
    %116 = vector.multi_reduction <add>, %115, %cst_35 [1] : vector<8x32xf32> to vector<8xf32>
    %117 = vector.shape_cast %116 : vector<8xf32> to vector<8x1xf32>
    %cst_36 = arith.constant 3.200000e+01 : f32
    %118 = vector.broadcast %cst_36 : f32 to vector<8x1xf32>
    %119 = arith.divf %117, %118 : vector<8x1xf32>
    %120 = vector.broadcast %112 : vector<8x1xf32> to vector<8x32xf32>
    %121 = arith.subf %106, %120 : vector<8x32xf32>
    %cst_37 = arith.constant 9.99999974E-6 : f32
    %122 = vector.broadcast %cst_37 : f32 to vector<8x1xf32>
    %123 = arith.addf %119, %122 : vector<8x1xf32>
    %124 = math.rsqrt %123 : vector<8x1xf32>
    %125 = vector.broadcast %124 : vector<8x1xf32> to vector<8x32xf32>
    %126 = arith.mulf %121, %125 : vector<8x32xf32>
    %127 = vector.broadcast %107 : vector<1x32xf32> to vector<8x32xf32>
    %128 = arith.mulf %126, %127 : vector<8x32xf32>
    %129 = vector.broadcast %108 : vector<1x32xf32> to vector<8x32xf32>
    %130 = arith.addf %128, %129 : vector<8x32xf32>
    %131 = arith.truncf %130 : vector<8x32xf32> to vector<8x32xbf16>
    %c0_38 = arith.constant 0 : index
    %c0_39 = arith.constant 0 : index
    %132 = vector.load %arg10[%c0_38, %c0_39] : memref<32x128xbf16, #tpu.memory_space<vmem>>, vector<32x128xbf16>
    %cst_40 = arith.constant dense<0.000000e+00> : vector<8x128xf32>
    %133 = tpu.matmul %131, %132, %cst_40 {dimension_numbers = #tpu.dot_dimension_numbers<[1], [0], [0], [1], [0, 0, 1, 1], [], []>} : vector<8x32xbf16>, vector<32x128xbf16>, vector<8x128xf32> -> vector<8x128xf32>
    %c0_41 = arith.constant 0 : index
    %c0_42 = arith.constant 0 : index
    %134 = vector.load %arg11[%c0_41, %c0_42] : memref<1x128xf32, #tpu.memory_space<vmem>>, vector<1x128xf32>
    %135 = vector.broadcast %134 : vector<1x128xf32> to vector<8x128xf32>
    %136 = arith.addf %133, %135 : vector<8x128xf32>
    %cst_43 = arith.constant 5.000000e-01 : f32
    %137 = vector.broadcast %cst_43 : f32 to vector<8x128xf32>
    %138 = arith.mulf %137, %136 : vector<8x128xf32>
    %cst_44 = arith.constant 4.471500e-02 : f32
    %139 = vector.broadcast %cst_44 : f32 to vector<8x128xf32>
    %140 = arith.mulf %139, %136 : vector<8x128xf32>
    %141 = arith.mulf %140, %136 : vector<8x128xf32>
    %142 = arith.mulf %141, %136 : vector<8x128xf32>
    %143 = arith.addf %136, %142 : vector<8x128xf32>
    %cst_45 = arith.constant 0.797884583 : f32
    %144 = vector.broadcast %cst_45 : f32 to vector<8x128xf32>
    %145 = arith.mulf %144, %143 : vector<8x128xf32>
    %146 = math.tanh %145 : vector<8x128xf32>
    %cst_46 = arith.constant 1.000000e+00 : f32
    %147 = vector.broadcast %cst_46 : f32 to vector<8x128xf32>
    %148 = arith.addf %147, %146 : vector<8x128xf32>
    %149 = arith.mulf %138, %148 : vector<8x128xf32>
    %150 = arith.truncf %149 : vector<8x128xf32> to vector<8x128xbf16>
    %c0_47 = arith.constant 0 : index
    %c0_48 = arith.constant 0 : index
    %151 = vector.load %arg12[%c0_47, %c0_48] : memref<128x32xbf16, #tpu.memory_space<vmem>>, vector<128x32xbf16>
    %cst_49 = arith.constant dense<0.000000e+00> : vector<8x32xf32>
    %152 = tpu.matmul %150, %151, %cst_49 {dimension_numbers = #tpu.dot_dimension_numbers<[1], [0], [0], [1], [0, 0, 1, 1], [], []>} : vector<8x128xbf16>, vector<128x32xbf16>, vector<8x32xf32> -> vector<8x32xf32>
    %c0_50 = arith.constant 0 : index
    %c0_51 = arith.constant 0 : index
    %153 = vector.load %arg13[%c0_50, %c0_51] : memref<1x32xf32, #tpu.memory_space<vmem>>, vector<1x32xf32>
    %154 = vector.broadcast %153 : vector<1x32xf32> to vector<8x32xf32>
    %155 = arith.addf %152, %154 : vector<8x32xf32>
    %156 = arith.addf %106, %155 : vector<8x32xf32>
    %c0_52 = arith.constant 0 : index
    %c0_53 = arith.constant 0 : index
    %c0_54 = arith.constant 0 : index
    %157 = vector.load %arg14[%c0_52, %c0_53, %c0_54] : memref<1x8x32xf32, #tpu.memory_space<vmem>>, vector<1x8x32xf32>
    %158 = vector.shape_cast %157 : vector<1x8x32xf32> to vector<8x32xf32>
    %159 = vector.shape_cast %156 : vector<8x32xf32> to vector<1x8x32xf32>
    tpu.vector_store %arg14[%c0_52, %c0_53, %c0_54], %159 {strides = array<i32>} : memref<1x8x32xf32, #tpu.memory_space<vmem>>, vector<1x8x32xf32>,
    return
  }
  func.func @transform_0(%arg0: i32) -> (i32, i32, i32) {
    %c0_i32 = arith.constant 0 : i32
    %c0_i32_0 = arith.constant 0 : i32
    %c0_i32_1 = arith.constant 0 : i32
    return %arg0, %c0_i32, %c0_i32_0 : i32, i32, i32
  }
  func.func @transform_1(%arg0: i32) -> (i32, i32) {
    %c0_i32 = arith.constant 0 : i32
    %c0_i32_0 = arith.constant 0 : i32
    %c0_i32_1 = arith.constant 0 : i32
    return %c0_i32, %c0_i32_0 : i32, i32
  }
  func.func @transform_2(%arg0: i32) -> (i32, i32) {
    %c0_i32 = arith.constant 0 : i32
    %c0_i32_0 = arith.constant 0 : i32
    %c0_i32_1 = arith.constant 0 : i32
    return %c0_i32, %c0_i32_0 : i32, i32
  }
  func.func @transform_3(%arg0: i32) -> (i32, i32) {
    %c0_i32 = arith.constant 0 : i32
    %c0_i32_0 = arith.constant 0 : i32
    %c0_i32_1 = arith.constant 0 : i32
    return %c0_i32, %c0_i32_0 : i32, i32
  }
  func.func @transform_4(%arg0: i32) -> (i32, i32) {
    %c0_i32 = arith.constant 0 : i32
    %c0_i32_0 = arith.constant 0 : i32
    %c0_i32_1 = arith.constant 0 : i32
    return %c0_i32, %c0_i32_0 : i32, i32
  }
  func.func @transform_5(%arg0: i32) -> (i32, i32) {
    %c0_i32 = arith.constant 0 : i32
    %c0_i32_0 = arith.constant 0 : i32
    %c0_i32_1 = arith.constant 0 : i32
    return %c0_i32, %c0_i32_0 : i32, i32
  }
  func.func @transform_6(%arg0: i32) -> (i32, i32) {
    %c0_i32 = arith.constant 0 : i32
    %c0_i32_0 = arith.constant 0 : i32
    %c0_i32_1 = arith.constant 0 : i32
    return %c0_i32, %c0_i32_0 : i32, i32
  }
  func.func @transform_7(%arg0: i32) -> (i32, i32) {
    %c0_i32 = arith.constant 0 : i32
    %c0_i32_0 = arith.constant 0 : i32
    %c0_i32_1 = arith.constant 0 : i32
    return %c0_i32, %c0_i32_0 : i32, i32
  }
  func.func @transform_8(%arg0: i32) -> (i32, i32) {
    %c0_i32 = arith.constant 0 : i32
    %c0_i32_0 = arith.constant 0 : i32
    %c0_i32_1 = arith.constant 0 : i32
    return %c0_i32, %c0_i32_0 : i32, i32
  }
  func.func @transform_9(%arg0: i32) -> (i32, i32) {
    %c0_i32 = arith.constant 0 : i32
    %c0_i32_0 = arith.constant 0 : i32
    %c0_i32_1 = arith.constant 0 : i32
    return %c0_i32, %c0_i32_0 : i32, i32
  }
  func.func @transform_10(%arg0: i32) -> (i32, i32) {
    %c0_i32 = arith.constant 0 : i32
    %c0_i32_0 = arith.constant 0 : i32
    %c0_i32_1 = arith.constant 0 : i32
    return %c0_i32, %c0_i32_0 : i32, i32
  }
  func.func @transform_11(%arg0: i32) -> (i32, i32) {
    %c0_i32 = arith.constant 0 : i32
    %c0_i32_0 = arith.constant 0 : i32
    %c0_i32_1 = arith.constant 0 : i32
    return %c0_i32, %c0_i32_0 : i32, i32
  }
  func.func @transform_12(%arg0: i32) -> (i32, i32) {
    %c0_i32 = arith.constant 0 : i32
    %c0_i32_0 = arith.constant 0 : i32
    %c0_i32_1 = arith.constant 0 : i32
    return %c0_i32, %c0_i32_0 : i32, i32
  }
  func.func @transform_13(%arg0: i32) -> (i32, i32, i32) {
    %c0_i32 = arith.constant 0 : i32
    %c0_i32_0 = arith.constant 0 : i32
    %c0_i32_1 = arith.constant 0 : i32
    return %arg0, %c0_i32, %c0_i32_0 : i32, i32, i32
  }
}

</mosaic_0001>

<bundles_post_ra>
// kernel: tpu_custom_call.1
= control target key start
LH: loop header
LB: loop body
LE: loop exit
PB: predicated region body
PF: predicated region fallthrough
CT: control target
= control target key end

     0   :  { %s2069_s0 = inlined_call_operand.vmem [shape: f32[2,8,32], index: 0, kind: input, shape index: {}]   ;;  %s2070_s1 = inlined_call_operand.vmem [shape: f32[1,32], index: 1, kind: input, shape index: {}]   ;;  %s2071_s2 = inlined_call_operand.vmem [shape: f32[1,32], index: 2, kind: input, shape index: {}]   ;;  %s2072_s3 = inlined_call_operand.vmem [shape: bf16[32,96], index: 3, kind: input, shape index: {}]   ;;  %s2073_s4 = inlined_call_operand.vmem [shape: f32[1,96], index: 4, kind: input, shape index: {}]   ;;  %s2074_s5 = inlined_call_operand.vmem [shape: bf16[32,32], index: 5, kind: input, shape index: {}]   ;;  %s2075_s6 = inlined_call_operand.vmem [shape: f32[1,32], index: 6, kind: input, shape index: {}]   ;;  %s2076_s7 = inlined_call_operand.vmem [shape: f32[1,32], index: 7, kind: input, shape index: {}]   ;;  %s2077_s8 = inlined_call_operand.vmem [shape: f32[1,32], index: 8, kind: input, shape index: {}]   ;;  %s2078_s9 = inlined_call_operand.vmem [shape: bf16[32,128], index: 9, kind: input, shape index: {}]   ;;  %s2079_s10 = inlined_call_operand.vmem [shape: f32[1,128], index: 10, kind: input, shape index: {}]   ;;  %s2080_s11 = inlined_call_operand.vmem [shape: bf16[128,32], index: 11, kind: input, shape index: {}]   ;;  %s2081_s12 = inlined_call_operand.vmem [shape: f32[1,32], index: 12, kind: input, shape index: {}]   ;;  %s2082_s13 = inlined_call_operand.hbm [shape: f32[2,8,32], index: 13, kind: output, shape index: {}]  }
   0x1   :  { %2083 = sst [smem:[#allocation5_spill]] %s2069_s0 }
   0x2   :  { %2084 = sst [smem:[#allocation6_spill]] %s2070_s1 }
   0x3   :  { %2085 = sst [smem:[#allocation7_spill]] %s2071_s2 }
   0x4   :  { %18 = vsyncpa [#allocation3], 0 }
   0x5   :  { %20 = vsyncpa [#allocation3 + $0x1], 0  ;;  %s1790_s25 = smov 0   ;;  %s1792_s26 = smov 0  }
   0x6   :  { %s1794_s27 = smov 0   ;;  %s1796_s28 = smov 0  }
   0x7 LB: > { %s1811_s29 = sadd.s32 4294967295, %s1707_s28   ;;  %s1391_s30 = sadd.s32 4294967294, %s1707_s28   ;;  %s1707_s28 = sphi %s1796_s28, %s2094_s28   ;;  %s1703_s27 = sphi %s1794_s27, %s2093_s27   ;;  %s1699_s26 = sphi %s1792_s26, %s2092_s26   ;;  %s1695_s25 = sphi %s1790_s25, %s2091_s25  }
   0x8   : > { %s1815_s14 = sadd.s32 1, %s1707_s28   ;;  %s311_s15 = sadd.s32 1, %s1703_s27 }
   0x9   : > { %s308_s16 = ssub.s32 %s1707_s28, %s1815_s14  ;;  %p321_p0 = scmp.ne.s32.totalorder %s1703_s27, %s1699_s26 }
   0xa   : > { %p309_p1 = scmp.eq.s32.totalorder %s308_s16, 0  ;;  %p322_p2 = scmp.eq.s32.totalorder %s1811_s29, 1 }
   0xb   : > { %p327_p3 = scmp.ne.s32.totalorder %s1699_s26, %s1695_s25  ;;  %p328_p4 = scmp.eq.s32.totalorder %s1391_s30, 1 }
   0xc   : > { %s1826_s17 = scalar_select %p309_p1, %s1703_s27, %s311_s15  }
   0xd   : > { %p1828_p5 = por %p322_p2, %p321_p0  ;;  %p1832_p6 = por %p328_p4, %p327_p3 }
   0xe   : > { %p1394_p7 = scmp.ge.s32.totalorder %s1707_s28, 1  ;;  %p389_p8 = scmp.lt.s32.totalorder %s1707_s28, 3 }
  0x10   : > { %p390_p9 = pnand %p1394_p7, %p389_p8 }
  0x11   : > { %p432_p10 = scmp.lt.s32.totalorder (!%p390_p9), %s1811_s29, 1  ;;  %vm440_vm0 = vcmask (!%p390_p9), 261120   ;;  %s2088_s0 = sld [smem:[#allocation5_spill]] (!%p390_p9)  ;;  %v1609_v7 = vld [vmem:[%s2072_s3] sm:$0xff] (!%p390_p9)   ;;  %v1709_v8 = vmov (!%p390_p9), 0.0   ;;  %vm1710_vm1 = vmmov (!%p390_p9), 0   ;;  %v557_v49 = vlaneseq (!%p390_p9) }
  0x12   : > { %393 = sbr.rel (%p390_p9) target bundleno = 2668 (0xa6c), region = 72  ;;  %1468 = vmatprep.subr.bf16.mxu0 (!%p390_p9), %v1709_v8  ;;  %1472 = vmatprep.mubr.msk.bf16.mxu0 (!%p390_p9), %vm1710_vm1, %v1709_v8  ;;  %v1610_v9 = vld [vmem:[%s2072_s3 + $0x8] sm:$0xff] (!%p390_p9)   ;;  %s2089_s1 = sld [smem:[#allocation6_spill]] (!%p390_p9)  ;;  %v1399_v20 = vld [vmem:[%s2073_s4] ss:$0 sm:$0xff] (!%p390_p9)  ;;  %vm573_vm2 = vcmask (!%p390_p9), 64512  }
  0x13   : > { %1469 = vmatpush3.bf16.msra.mxu0 (!%p390_p9), %v1609_v7  ;;  %1488 = vmatprep.subr.bf16.mxu1 (!%p390_p9), %v1709_v8  ;;  %s2090_s2 = sld [smem:[#allocation7_spill]] (!%p390_p9)  ;;  %s1711_s16 = smov (!%p390_p9), 104   ;;  %v558_v50 = vshrl.u32 (!%p390_p9), %v557_v49, 7  ;;  %v560_v51 = vand.u32 (!%p390_p9), 127, %v557_v49  ;;  %vm826_vm4 = vcmask (!%p390_p9), 1043456   ;;  %vm1027_vm5 = vcmask (!%p390_p9), 130048  }
  0x14   : > { %1470 = vmatprep.subr.bf16.mxu0 (!%p390_p9), %v1709_v8  ;;  %1490 = vmatprep.mubr.msk.bf16.mxu1 (!%p390_p9), %vm1710_vm1, %v1709_v8  ;;  %s1714_s22 = smov (!%p390_p9), 96   ;;  %s1715_s23 = smov (!%p390_p9), 64   ;;  %vm1029_vm6 = vcmask (!%p390_p9), 195584  }
  0x15   : > { %vm561_vm3 = vcmp.ge.s32.totalorder (!%p390_p9), %v558_v50, %v560_v51 }
  0x17   : > { %1471 = vmatpush3.bf16.msra.mxu0 (!%p390_p9), %v1610_v9 }
  0x18   : > { %1476 = vmatprep.subr.bf16.mxu0 (!%p390_p9), %v1709_v8  ;;  %v1397_v14 = vld [vmem:[%s2089_s1] ss:$0 sm:$0xff] (!%p390_p9) }
  0x19   : > { %s433_s20 = scalar_select %p432_p10, %s1811_s29, 1  ;;  %v1398_v16 = vld [vmem:[%s2090_s2] ss:$0 sm:$0xff] }
  0x1b   : > { %s1396_s21 = sshll.u32 %s433_s20, 3  ;;  %s1712_s20 = smov 120  }
  0x1c   : > { %s435_s24 = scalar_lea.vmem %s2088_s0, %s1396_s21  ;;  %s1713_s21 = smov 112  }
  0x1d   : > { %v1843_v0 = vld [vmem:[%s435_s24] sm:$0xff] }
  0x1e   : > { %v441_v1 = vsel %vm440_vm0, %v1843_v0, 0.0 }
  0x1f   : > { %442 = vadd.xlane.f32.xlu0 %v441_v1 }
  0xac   : > { %v443_v2 = vpop.xlane.xlu0 %442 }
  0xad   : > { %v445_v3 = vmul.f32 0.03125, %v443_v2 }
  0xaf   : > { %v446_v4 = vsub.f32 %v1843_v0, %v445_v3 }
  0xb1   : > { %v447_v5 = vmul.f32 %v446_v4, %v446_v4 }
  0xb3   : > { %v448_v6 = vsel %vm440_vm0, %v447_v5, 0.0 }
  0xb4   : > { %449 = vadd.xlane.f32.xlu0 %v448_v6 }
 0x141   : > { %v450_v10 = vpop.xlane.xlu0 %449 }
 0x142   : > { %v451_v11 = vmul.f32 0.03125, %v450_v10 }
 0x144   : > { %v452_v12 = vadd.f32 1e-05, %v451_v11 }
 0x146   : > { %1623 = vrsqrt.f32 %v452_v12 }
 0x150   : > { %v1624_v13 = vpop.eup %1623 }
 0x151   : > { %v454_v15 = vmul.f32 %v1624_v13, %v446_v4 }
 0x153   : > { %v461_v17 = vmul.f32 %v1397_v14, %v454_v15 }
 0x155   : > { %v468_v18 = vadd.f32 %v1398_v16, %v461_v17 }
 0x157   : > { %v469_v19 = vpack.c.bf16 %v468_v18, %v468_v18 }
 0x159   : > { %1473 = vmatmul.mubr.msk.bf16.vlgmr.msra.gmra.mrb[0].mxu0 %vm440_vm0, %v469_v19 }
 0x15a   : > { %1478 = vmatprep.mubr.msk.bf16.mxu0 %vm1710_vm1, %v1709_v8 }
 0x22c   : > { %v530_v21 = vpop.f32.mrb[0].mxu0 }
 0x22d   : > { %v531_v22 = vadd.f32 %v1399_v20, %v530_v21  ;;  %v1474_v23 = vpop.f32.mrb[1].mxu0 }
 0x22e   : > { %v533_v24 = vpop.f32.mrb[2].mxu0 }
 0x22f   : > { %554 = vrot.lane.b32.xlu0 %v531_v22, %s1711_s16  ;;  %548 = vrot.lane.b32.xlu1 %v531_v22, %s1712_s20  ;;  %v1475_v25 = vpop.f32.mrb[3].mxu0  ;;  %v536_v26 = vmul.f32 0.35355338, %v531_v22  ;;  %v1875_v27 = vpack.c.bf16 %v531_v22, %v531_v22 }
 0x231   : > { %v562_v36 = vpack.c.bf16 %v536_v26, %v536_v26 }
 0x233   : > { %551 = vrot.lane.b32.xlu1 %v531_v22, %s1713_s21  ;;  %544 = vrot.lane.b32.xlu0 %v536_v26, %s1711_s16  ;;  %s429_s16 = sand.u32 1, %s1699_s26  }
 0x237   : > { %571 = vrot.lane.b32.xlu1 %v1875_v27, %s1714_s22 }
 0x23b   : > { %538 = vrot.lane.b32.xlu1 %v536_v26, %s1712_s20  ;;  %s1716_s20 = smov 8  }
 0x2a1   : > { %v549_v28 = vpop.permute.xlu1 %548  ;;  %v555_v32 = vpop.permute.xlu0 %554 }
 0x2a2   : > { %v1878_v29 = vpack.c.bf16 %v549_v28, %v549_v28  ;;  %v1884_v34 = vpack.c.bf16 %v555_v32, %v555_v32 }
 0x2a4   : > { %621 = vrot.lane.b32.xlu1 %v1878_v29, %s1714_s22 }
 0x2a5   : > { %v552_v30 = vpop.permute.xlu1 %551  ;;  %v545_v45 = vpop.permute.xlu0 %544 }
 0x2a6   : > { %v1881_v31 = vpack.c.bf16 %v552_v30, %v552_v30  ;;  %v565_v48 = vpack.c.bf16 %v545_v45, %v545_v45 }
 0x2a8   : > { %670 = vrot.lane.b32.xlu1 %v1881_v31, %s1714_s22 }
 0x2a9   : > { %v572_v33 = vpop.permute.xlu1 %571 }
 0x2aa   : > { %v578_v35 = vsel %vm573_vm2, %v572_v33, 0 }
 0x2ab   : > { %1477 = vmatpush3.bf16.xpose.msra.mxu0 %v578_v35 }
 0x2ac   : > { %719 = vrot.lane.b32.xlu1 %v1884_v34, %s1714_s22  ;;  %1482 = vmatprep.subr.bf16.mxu0 %v1709_v8  ;;  %s1718_s22 = smov 24  }
 0x2ad   : > { %v539_v37 = vpop.permute.xlu1 %538 }
 0x2ae   : > { %v563_v42 = vpack.c.bf16 %v539_v37, %v539_v37 }
 0x2b0   : > { %541 = vrot.lane.b32.xlu1 %v536_v26, %s1713_s21  ;;  %s1717_s21 = smov 16  }
 0x2b2   : > { %1479 = vmatmul.mubr.msk.bf16.vlgmr.msra.gmra.mrb[4].mxu0 %vm573_vm2, %v562_v36 }
 0x2b3   : > { %1484 = vmatprep.mubr.msk.bf16.mxu0 %vm1710_vm1, %v1709_v8 }
 0x316   : > { %v622_v38 = vpop.permute.xlu1 %621 }
 0x317   : > { %v627_v39 = vsel %vm573_vm2, %v622_v38, 0 }
 0x318   : > { %1483 = vmatpush3.bf16.xpose.msra.mxu0 %v627_v39 }
 0x319   : > { %1494 = vmatprep.subr.bf16.mxu0 %v1709_v8 }
 0x31a   : > { %v671_v40 = vpop.permute.xlu1 %670 }
 0x31b   : > { %v676_v41 = vsel %vm573_vm2, %v671_v40, 0 }
 0x31c   : > { %1489 = vmatpush3.bf16.xpose.msra.mxu1 %v676_v41 }
 0x31d   : > { %1500 = vmatprep.subr.bf16.mxu1 %v1709_v8 }
 0x31e   : > { %v720_v43 = vpop.permute.xlu1 %719 }
 0x31f   : > { %v725_v44 = vsel %vm573_vm2, %v720_v43, 0  ;;  %1485 = vmatmul.mubr.msk.bf16.vlgmr.msra.gmra.mrb[8].mxu0 %vm573_vm2, %v563_v42 }
 0x320   : > { %1495 = vmatpush3.bf16.xpose.msra.mxu0 %v725_v44  ;;  %1496 = vmatprep.mubr.msk.bf16.mxu0 %vm1710_vm1, %v1709_v8 }
 0x321   : > { %1506 = vmatprep.subr.bf16.mxu0 %v1709_v8 }
 0x322   : > { %v542_v46 = vpop.permute.xlu1 %541 }
 0x323   : > { %v564_v47 = vpack.c.bf16 %v542_v46, %v542_v46 }
 0x325   : > { %1491 = vmatmul.mubr.msk.bf16.vlgmr.msra.gmra.mrb[0].mxu1 %vm573_vm2, %v564_v47 }
 0x326   : > { %1502 = vmatprep.mubr.msk.bf16.mxu1 %vm1710_vm1, %v1709_v8 }
 0x327   : > { %1497 = vmatmul.mubr.msk.bf16.vlgmr.msra.gmra.mrb[12].mxu0 %vm573_vm2, %v565_v48 }
 0x328   : > { %1508 = vmatprep.mubr.msk.bf16.mxu0 %vm1710_vm1, %v1709_v8 }
 0x385   : > { %v614_v52 = vpop.f32.mrb[4].mxu0 }
 0x386   : > { %v769_v53 = vsel %vm561_vm3, %v614_v52, -1e+30  ;;  %v1480_v54 = vpop.f32.mrb[5].mxu0 }
 0x387   : > { %v617_v55 = vpop.f32.mrb[6].mxu0  ;;  %v773_v56 = vsel %vm573_vm2, %v769_v53, -inf }
 0x388   : > { %774 = vmax.xlane.f32.xlu1 %v773_v56  ;;  %v1481_v57 = vpop.f32.mrb[7].mxu0 }
 0x3f2   : > { %v663_v58 = vpop.f32.mrb[8].mxu0 }
 0x3f3   : > { %v770_v59 = vsel %vm561_vm3, %v663_v58, -1e+30  ;;  %v1486_v60 = vpop.f32.mrb[9].mxu0 }
 0x3f4   : > { %v666_v61 = vpop.f32.mrb[10].mxu0  ;;  %v776_v62 = vsel %vm573_vm2, %v770_v59, -inf }
 0x3f5   : > { %777 = vmax.xlane.f32.xlu0 %v776_v62  ;;  %v1487_v63 = vpop.f32.mrb[11].mxu0  ;;  %v1611_v62 = vld [vmem:[%s2074_s5] sm:$0xff]  }
 0x3f6   : > { %v1612_v63 = vld [vmem:[%s2074_s5 + $0x8] sm:$0xff]  }
 0x3f8   : > { %v712_v1 = vpop.f32.mrb[0].mxu1 }
 0x3f9   : > { %v771_v2 = vsel %vm561_vm3, %v712_v1, -1e+30  ;;  %v1492_v3 = vpop.f32.mrb[1].mxu1 }
 0x3fa   : > { %v715_v4 = vpop.f32.mrb[2].mxu1  ;;  %v761_v5 = vpop.f32.mrb[12].mxu0  ;;  %v779_v6 = vsel %vm573_vm2, %v771_v2, -inf }
 0x3fb   : > { %v772_v7 = vsel %vm561_vm3, %v761_v5, -1e+30  ;;  %v1493_v9 = vpop.f32.mrb[3].mxu1  ;;  %780 = vmax.xlane.f32.xlu0 %v779_v6  ;;  %v1498_v10 = vpop.f32.mrb[13].mxu0 }
 0x3fc   : > { %v764_v11 = vpop.f32.mrb[14].mxu0  ;;  %v782_v12 = vsel %vm573_vm2, %v772_v7, -inf }
 0x3fd   : > { %783 = vmax.xlane.f32.xlu1 %v782_v12  ;;  %v1499_v13 = vpop.f32.mrb[15].mxu0 }
 0x40e   : > { %870 = vrot.lane.b32.xlu1 %v1878_v29, %s1715_s23 }
 0x411   : > { %821 = vrot.lane.b32.xlu0 %v1875_v27, %s1715_s23 }
 0x415   : > { %v775_v14 = vpop.xlane.xlu1 %774 }
 0x416   : > { %v785_v15 = vsub.f32 %v769_v53, %v775_v14 }
 0x418   : > { %v789_v16 = vmul.f32 1.442695, %v785_v15 }
 0x41a   : > { %1625 = vpow2.f32 %v789_v16 }
 0x424   : > { %v1626_v17 = vpop.eup %1625 }
 0x425   : > { %v797_v18 = vsel %vm573_vm2, %v1626_v17, 0.0 }
 0x430   : > { %798 = vadd.xlane.f32.xlu0 %v797_v18 }
 0x482   : > { %v778_v19 = vpop.xlane.xlu0 %777 }
 0x483   : > { %v786_v20 = vsub.f32 %v770_v59, %v778_v19 }
 0x485   : > { %v791_v21 = vmul.f32 1.442695, %v786_v20 }
 0x487   : > { %1627 = vpow2.f32 %v791_v21  ;;  %v1411_v21 = vld [vmem:[%s2075_s6] ss:$0 sm:$0xff] }
 0x488   : > { %v781_v22 = vpop.xlane.xlu0 %780 }
 0x489   : > { %v787_v23 = vsub.f32 %v771_v2, %v781_v22 }
 0x48a   : > { %v784_v24 = vpop.xlane.xlu1 %783 }
 0x48b   : > { %v793_v25 = vmul.f32 1.442695, %v787_v23  ;;  %v788_v26 = vsub.f32 %v772_v7, %v784_v24 }
 0x48c   : > { %v822_v28 = vpop.permute.xlu0 %821 }
 0x48d   : > { %1629 = vpow2.f32 %v793_v25  ;;  %v795_v27 = vmul.f32 1.442695, %v788_v26  ;;  %v828_v29 = vsel %vm826_vm4, %v822_v28, 0 }
 0x48e   : > { %1501 = vmatpush3.bf16.msra.mxu1 %v828_v29  ;;  %v871_v30 = vpop.permute.xlu1 %870 }
 0x48f   : > { %1631 = vpow2.f32 %v795_v27  ;;  %v876_v32 = vsel %vm826_vm4, %v871_v30, 0  ;;  %1512 = vmatprep.subr.bf16.mxu1 %v1709_v8 }
 0x490   : > { %1507 = vmatpush3.bf16.msra.mxu0 %v876_v32 }
 0x491   : > { %v1628_v33 = vpop.eup %1627  ;;  %1518 = vmatprep.subr.bf16.mxu0 %v1709_v8 }
 0x492   : > { %v800_v35 = vsel %vm573_vm2, %v1628_v33, 0.0 }
 0x493   : > { %801 = vadd.xlane.f32.xlu1 %v800_v35 }
 0x497   : > { %v1630_v36 = vpop.eup %1629 }
 0x498   : > { %v803_v37 = vsel %vm573_vm2, %v1630_v36, 0.0 }
 0x499   : > { %v1632_v38 = vpop.eup %1631  ;;  %804 = vadd.xlane.f32.xlu0 %v803_v37  ;;  %v1615_v37 = vld [vmem:[%s2080_s11] sm:$0xff]  }
 0x49a   : > { %v806_v39 = vsel %vm573_vm2, %v1632_v38, 0.0 }
 0x49b   : > { %807 = vadd.xlane.f32.xlu1 %v806_v39 }
 0x4ac   : > { %918 = vrot.lane.b32.xlu1 %v1881_v31, %s1715_s23 }
 0x4af   : > { %966 = vrot.lane.b32.xlu0 %v1884_v34, %s1715_s23  ;;  %s1431_s23 = sshll.u32 %s1811_s29, 7  ;;  %s1319_s29 = scalar_lea.sflag [#allocation3], %s429_s16 }
 0x4b0   : > { %s2026_s1 = scalar_lea.hbm %s2082_s13, %s1431_s23 }
 0x4bd   : > { %v799_v40 = vpop.xlane.xlu0 %798 }
 0x4be   : > { %1633 = vrcp.f32 %v799_v40 }
 0x4c8   : > { %v1634_v41 = vpop.eup %1633 }
 0x4c9   : > { %v813_v42 = vmul.f32 %v1634_v41, %v1626_v17 }
 0x4cb   : > { %v817_v43 = vpack.c.bf16 %v813_v42, %v813_v42  ;;  %v1415_v42 = vld [vmem:[%s2076_s7] ss:$0 sm:$0xff] }
 0x4cd   : > { %1503 = vmatmul.mubr.msk.bf16.vlgmr.msra.gmra.mrb[4].mxu1 %vm573_vm2, %v817_v43 }
 0x4ce   : > { %1514 = vmatprep.mubr.msk.bf16.mxu1 %vm1710_vm1, %v1709_v8 }
 0x520   : > { %v802_v44 = vpop.xlane.xlu1 %801 }
 0x521   : > { %1635 = vrcp.f32 %v802_v44  ;;  %v1416_v44 = vld [vmem:[%s2077_s8] ss:$0 sm:$0xff] }
 0x526   : > { %v805_v45 = vpop.xlane.xlu0 %804 }
 0x527   : > { %1637 = vrcp.f32 %v805_v45 }
 0x528   : > { %v808_v46 = vpop.xlane.xlu1 %807 }
 0x529   : > { %1639 = vrcp.f32 %v808_v46 }
 0x52a   : > { %v967_v34 = vpop.permute.xlu0 %966 }
 0x52b   : > { %v1636_v31 = vpop.eup %1635  ;;  %v972_v51 = vsel %vm826_vm4, %v967_v34, 0  ;;  %v1618_v34 = vld [vmem:[%s2080_s11 + $0x18] sm:$0xff]  }
 0x52c   : > { %v814_v47 = vmul.f32 %v1636_v31, %v1628_v33  ;;  %v919_v48 = vpop.permute.xlu1 %918 }
 0x52d   : > { %v924_v49 = vsel %vm826_vm4, %v919_v48, 0  ;;  %v1617_v48 = vld [vmem:[%s2080_s11 + $0x10] sm:$0xff]  }
 0x52e   : > { %1513 = vmatpush3.bf16.msra.mxu1 %v924_v49  ;;  %v818_v50 = vpack.c.bf16 %v814_v47, %v814_v47  ;;  %v1616_v47 = vld [vmem:[%s2080_s11 + $0x8] sm:$0xff]   ;;  %v1619_v49 = vld [vmem:[%s2080_s11 + $0x20] sm:$0xff]  }
 0x52f   : > { %1524 = vmatprep.subr.bf16.mxu1 %v1709_v8 }
 0x530   : > { %1509 = vmatmul.mubr.msk.bf16.vlgmr.msra.gmra.mrb[16].mxu0 %vm573_vm2, %v818_v50  ;;  %v1620_v50 = vld [vmem:[%s2080_s11 + $0x28] sm:$0xff]  }
 0x531   : > { %v1638_v52 = vpop.eup %1637  ;;  %1519 = vmatpush3.bf16.msra.mxu0 %v972_v51  ;;  %1520 = vmatprep.mubr.msk.bf16.mxu0 %vm1710_vm1, %v1709_v8  ;;  %v1621_v51 = vld [vmem:[%s2080_s11 + $0x30] sm:$0xff]  }
 0x532   : > { %v815_v53 = vmul.f32 %v1638_v52, %v1630_v36  ;;  %1532 = vmatprep.subr.bf16.mxu0 %v1709_v8  ;;  %v1613_v36 = vld [vmem:[%s2078_s9] sm:$0xff]   ;;  %v1622_v52 = vld [vmem:[%s2080_s11 + $0x38] sm:$0xff]  }
 0x533   : > { %v1640_v54 = vpop.eup %1639 }
 0x534   : > { %v816_v55 = vmul.f32 %v1640_v54, %v1632_v38  ;;  %v819_v56 = vpack.c.bf16 %v815_v53, %v815_v53  ;;  %v1417_v53 = vld [vmem:[%s2079_s10] ss:$0 sm:$0xff] }
 0x536   : > { %1515 = vmatmul.mubr.msk.bf16.vlgmr.msra.gmra.mrb[8].mxu1 %vm573_vm2, %v819_v56  ;;  %v820_v57 = vpack.c.bf16 %v816_v55, %v816_v55 }
 0x537   : > { %1528 = vmatprep.mubr.msk.bf16.mxu1 %vm1710_vm1, %v1709_v8  ;;  %1525 = vmatpush3.bf16.msra.mxu1 %v1611_v62 }
 0x538   : > { %1521 = vmatmul.mubr.msk.bf16.vlgmr.msra.gmra.mrb[20].mxu0 %vm573_vm2, %v820_v57  ;;  %1526 = vmatprep.subr.bf16.mxu1 %v1709_v8 }
 0x539   : > { %1536 = vmatprep.mubr.msk.bf16.mxu0 %vm1710_vm1, %v1709_v8  ;;  %1533 = vmatpush3.bf16.msra.mxu0 %v1613_v36 }
 0x53a   : > { %1534 = vmatprep.subr.bf16.mxu0 %v1709_v8 }
 0x53b   : > { %1527 = vmatpush3.bf16.msra.mxu1 %v1612_v63 }
 0x53c   : > { %1540 = vmatprep.subr.bf16.mxu1 %v1709_v8 }
 0x5a0   : > { %v864_v58 = vpop.f32.mrb[4].mxu1 }
 0x5a1   : > { %v1504_v59 = vpop.f32.mrb[5].mxu1 }
 0x5a2   : > { %v867_v60 = vpop.f32.mrb[6].mxu1 }
 0x5a3   : > { %v1505_v61 = vpop.f32.mrb[7].mxu1 }
 0x603   : > { %v912_v1 = vpop.f32.mrb[16].mxu0 }
 0x604   : > { %1015 = vrot.lane.b32.xlu1 %v912_v1, %s1716_s20  ;;  %v1510_v2 = vpop.f32.mrb[17].mxu0  ;;  %s1395_s20 = sshll.u32 %s429_s16, 3 }
 0x605   : > { %v915_v3 = vpop.f32.mrb[18].mxu0  ;;  %s431_s24 = scalar_lea.vmem [#allocation2], %s1395_s20 }
 0x606   : > { %v1511_v4 = vpop.f32.mrb[19].mxu0  ;;  %s1332_s30 = sshll.u32 %s431_s24, 4  ;;  %s2028_s30 = int_to_ptr.vmem [resolvable:$true] %s1332_s30 }
 0x607   : > { %s1645_s20 = scalar_lea.vmem %s2028_s30, 128 }
 0x608   : > { %p1646_p11 = scmp.ne.s32.totalorder %s2028_s30, %s1645_s20 }
 0x609   : > { %v960_v5 = vpop.f32.mrb[8].mxu1 }
 0x60a   : > { %1019 = vrot.lane.b32.xlu0 %v960_v5, %s1717_s21  ;;  %v1516_v6 = vpop.f32.mrb[9].mxu1  ;;  %v1421_v5 = vld [vmem:[%s2081_s12] ss:$0 sm:$0xff]  ;;  %p1647_p12 = pnand %p1646_p11, %p1828_p5  ;;  %s1719_s21 = smov [#allocation2]  }
 0x60b   : > { %v963_v7 = vpop.f32.mrb[10].mxu1  ;;  %v1008_v9 = vpop.f32.mrb[20].mxu0 }
 0x60c   : > { %v1517_v10 = vpop.f32.mrb[11].mxu1  ;;  %1023 = vrot.lane.b32.xlu1 %v1008_v9, %s1718_s22  ;;  %v1522_v11 = vpop.f32.mrb[21].mxu0  ;;  %p1648_p13 = pneg %p1647_p12  ;;  %s1649_s22 = sshll.u32 %s1719_s21, 4  ;;  %s1650_s22 = int_to_ptr.vmem [resolvable:$false] %s1649_s22 }
 0x60d   : > { %v1011_v12 = vpop.f32.mrb[22].mxu0  ;;  %s1651_s2 = scalar_lea.vmem %s1650_s22, 256  ;;  %p1652_p0 = scmp.lt.s32.totalorder %s2028_s30, %s1650_s22 }
 0x60e   : > { %v1523_v13 = vpop.f32.mrb[23].mxu0  ;;  %p1653_p1 = scmp.lt.s32.totalorder %s1651_s2, %s1645_s20 }
 0x610   : > { %p1654_p2 = por %p1653_p1, %p1652_p0 }
 0x612   : > { %p1655_p3 = pnand %p1654_p2, %p1648_p13 }
 0x676   : > { %v1016_v14 = vpop.permute.xlu1 %1015 }
 0x677   : > { %v1026_v15 = vsel %vm573_vm2, %v864_v58, %v1016_v14 }
 0x67c   : > { %v1020_v16 = vpop.permute.xlu0 %1019 }
 0x67d   : > { %v1028_v17 = vsel %vm1027_vm5, %v1026_v15, %v1020_v16 }
 0x67e   : > { %v1024_v18 = vpop.permute.xlu1 %1023 }
 0x67f   : > { %v1030_v19 = vsel %vm1029_vm6, %v1028_v17, %v1024_v18 }
 0x680   : > { %v1031_v20 = vpack.c.bf16 %v1030_v19, %v1030_v19 }
 0x682   : > { %1529 = vmatmul.mubr.msk.bf16.vlgmr.msra.gmra.mrb[12].mxu1 %vm440_vm0, %v1031_v20 }
 0x683   : > { %1556 = vmatprep.mubr.msk.bf16.mxu1 %vm1710_vm1, %v1709_v8  ;;  %1541 = vmatpush3.bf16.msra.mxu1 %v1615_v37 }
 0x684   : > { %1542 = vmatprep.subr.bf16.mxu1 %v1709_v8 }
 0x687   : > { %1543 = vmatpush3.bf16.msra.mxu1 %v1616_v47 }
 0x688   : > { %1544 = vmatprep.subr.bf16.mxu1 %v1709_v8 }
 0x68b   : > { %1545 = vmatpush3.bf16.msra.mxu1 %v1617_v48 }
 0x68c   : > { %1546 = vmatprep.subr.bf16.mxu1 %v1709_v8 }
 0x68f   : > { %1547 = vmatpush3.bf16.msra.mxu1 %v1618_v34 }
 0x690   : > { %1548 = vmatprep.subr.bf16.mxu1 %v1709_v8 }
 0x693   : > { %1549 = vmatpush3.bf16.msra.mxu1 %v1619_v49 }
 0x694   : > { %1550 = vmatprep.subr.bf16.mxu1 %v1709_v8 }
 0x697   : > { %1551 = vmatpush3.bf16.msra.mxu1 %v1620_v50 }
 0x698   : > { %1552 = vmatprep.subr.bf16.mxu1 %v1709_v8 }
 0x69b   : > { %1553 = vmatpush3.bf16.msra.mxu1 %v1621_v51 }
 0x69c   : > { %1554 = vmatprep.subr.bf16.mxu1 %v1709_v8 }
 0x69f   : > { %1555 = vmatpush3.bf16.msra.mxu1 %v1622_v52 }
 0x755   : > { %v1092_v22 = vpop.f32.mrb[12].mxu1 }
 0x756   : > { %v1093_v23 = vadd.f32 %v1411_v21, %v1092_v22  ;;  %v1530_v24 = vpop.f32.mrb[13].mxu1 }
 0x757   : > { %v1095_v25 = vpop.f32.mrb[14].mxu1 }
 0x758   : > { %v1963_v26 = vadd.f32 %v1093_v23, %v1843_v0  ;;  %v1531_v28 = vpop.f32.mrb[15].mxu1  ;;  %v1614_v0 = vld [vmem:[%s2078_s9 + $0x8] sm:$0xff]  }
 0x759   : > { %1535 = vmatpush3.bf16.msra.mxu0 %v1614_v0 }
 0x75a   : > { %v1101_v27 = vsel %vm440_vm0, %v1963_v26, 0.0 }
 0x75b   : > { %1102 = vadd.xlane.f32.xlu0 %v1101_v27 }
 0x7e8   : > { %v1103_v29 = vpop.xlane.xlu0 %1102 }
 0x7e9   : > { %v1104_v30 = vmul.f32 0.03125, %v1103_v29 }
 0x7eb   : > { %v1105_v32 = vsub.f32 %v1963_v26, %v1104_v30 }
 0x7ed   : > { %v1106_v33 = vmul.f32 %v1105_v32, %v1105_v32 }
 0x7ef   : > { %v1107_v35 = vsel %vm440_vm0, %v1106_v33, 0.0 }
 0x7f0   : > { %1108 = vadd.xlane.f32.xlu1 %v1107_v35 }
 0x87d   : > { %v1109_v38 = vpop.xlane.xlu1 %1108 }
 0x87e   : > { %v1110_v39 = vmul.f32 0.03125, %v1109_v38 }
 0x880   : > { %v1111_v40 = vadd.f32 1e-05, %v1110_v39 }
 0x882   : > { %1641 = vrsqrt.f32 %v1111_v40 }
 0x88c   : > { %v1642_v41 = vpop.eup %1641 }
 0x88d   : > { %v1113_v43 = vmul.f32 %v1642_v41, %v1105_v32 }
 0x88f   : > { %v1120_v45 = vmul.f32 %v1415_v42, %v1113_v43 }
 0x891   : > { %v1127_v46 = vadd.f32 %v1416_v44, %v1120_v45 }
 0x893   : > { %v1128_v31 = vpack.c.bf16 %v1127_v46, %v1127_v46 }
 0x895   : > { %1537 = vmatmul.mubr.msk.bf16.vlgmr.msra.gmra.mrb[24].mxu0 %vm440_vm0, %v1128_v31 }
 0x968   : > { %v1189_v54 = vpop.f32.mrb[24].mxu0 }
 0x969   : > { %v1190_v55 = vadd.f32 %v1417_v53, %v1189_v54  ;;  %v1538_v56 = vpop.f32.mrb[25].mxu0 }
 0x96a   : > { %v1192_v57 = vpop.f32.mrb[26].mxu0 }
 0x96b   : > { %v1196_v58 = vmul.f32 0.044715, %v1190_v55  ;;  %v1539_v59 = vpop.f32.mrb[27].mxu0  ;;  %v1195_v8 = vmul.f32 0.5, %v1190_v55 }
 0x96d   : > { %v1197_v60 = vmul.f32 %v1196_v58, %v1190_v55 }
 0x96f   : > { %v1198_v61 = vmul.f32 %v1197_v60, %v1190_v55 }
 0x971   : > { %v1199_v62 = vadd.f32 %v1198_v61, %v1190_v55 }
 0x973   : > { %v1200_v63 = vmul.f32 0.7978846, %v1199_v62 }
 0x975   : > { %1643 = vtanh.f32 %v1200_v63 }
 0x97f   : > { %v1644_v1 = vpop.eup %1643 }
 0x980   : > { %v1202_v2 = vadd.f32 1.0, %v1644_v1 }
 0x982   : > { %v1203_v3 = vmul.f32 %v1202_v2, %v1195_v8 }
 0x984   : > { %v1204_v4 = vpack.c.bf16 %v1203_v3, %v1203_v3 }
 0x986   : > { %1557 = vmatmul.mubr.bf16.vlgmr.msra.gmra.mrb[16].mxu1 %v1204_v4 }
 0xa59   : > { %v1310_v6 = vpop.f32.mrb[16].mxu1 }
 0xa5a   : > { %v1311_v7 = vadd.f32 %v1421_v5, %v1310_v6  ;;  %v1558_v9 = vpop.f32.mrb[17].mxu1 }
 0xa5b   : > { %v1313_v10 = vpop.f32.mrb[18].mxu1 }
 0xa5c   : > { %v1316_v11 = vadd.f32 %v1311_v7, %v1963_v26  ;;  %v1559_v12 = vpop.f32.mrb[19].mxu1 }
 0xa5e   : > { %1317 = vst.msk [vmem:[%s431_s24] sm:$0xff] %vm440_vm0, %v1316_v11 }
 0xa5f   : > { %1658 = shalt.err (!%p1655_p3)
}
 0xa60   : > { %s1659_s0 = scalar_lea.hbm %s2026_s1, 128  ;;  %s1663_s24 = scalar_lea.hbm %s2082_s13, 256 }
 0xa61   : > { %p1660_p4 = scmp.ne.s32.totalorder %s2026_s1, %s1659_s0  ;;  %p1664_p9 = scmp.lt.u32.totalorder %s2026_s1, %s2082_s13 }
 0xa62   : > { %p1665_p10 = scmp.lt.u32.totalorder %s1663_s24, %s1659_s0  ;;  %p1667_p12 = scmp.lt.u32.totalorder %s1659_s0, %s2026_s1 }
 0xa63   : > { %p1661_p7 = pnand %p1660_p4, %p1828_p5 }
 0xa64   : > { %p1666_p11 = por %p1665_p10, %p1664_p9 }
 0xa65   : > { %p1662_p8 = pneg %p1661_p7 }
 0xa66   : > { %p1668_p13 = por %p1667_p12, %p1666_p11 }
 0xa68   : > { %p1669_p0 = pnand %p1668_p13, %p1662_p8 }
 0xa6a   : > { %1672 = shalt.err (!%p1669_p0)
}
 0xa6b   : > { %1560 = dma.vmem_to_hbm [thread:$0]  (%p1828_p5), %s2028_s30, 128, %s2026_s1, %s1319_s29  }
 0xa6c PF: > { %p1566_p1 = scmp.ge.s32.totalorder %s1707_s28, 2  ;;  %s1344_s2 = sand.u32 1, %s1695_s25  }
 0xa6d   : > { %s1345_s20 = scalar_lea.sflag [#allocation3], %s1344_s2 }
 0xa6e   : > { %p1563_p2 = pnand %p1566_p1, %p1832_p6 }
 0xa70   : > { %1690 = dma.done.wait (!%p1563_p2), %s1345_s20, 128  }
 0xa71   : > { %1692 = vsyncadd (!%p1563_p2), %s1345_s20, 4294967168  ;;  %p23_p3 = scmp.ge.s32.totalorder %s1815_s14, 4   ;;  %s2091_s25 = smov %s1699_s26 }
 0xa72   : > { %s2092_s26 = smov %s1703_s27  ;;  %s2093_s27 = smov %s1826_s17 }
 0xa73   : > { %s2094_s28 = smov %s1815_s14  ;;  %25 = sbr.rel (!%p23_p3) target bundleno = 7 (0x7), region = 107 }
 0xa7a   :  { %1350 = vsyncpa [#allocation3], 1 }
 0xa7b   :  { %1352 = vsyncpa [#allocation3 + $0x1], 1 }

</bundles_post_ra>
